<compile_context>
chip_gen: v7x
topology: tpu7x:2x2x1
jax: 0.10.0
libtpu: 0.0.40
codegen_flags: <defaults>
</compile_context>

<pallas_src>
import functools
import math

import jax
import jax.numpy as jnp
from jax.experimental import pallas as pl
from jax.experimental.pallas import tpu as pltpu


def _round_up(x, m):
    return ((x + m - 1) // m) * m


# --------------------------------------------------------------------------
# Fused Pallas kernel: all layers in one launch, activation resident in VMEM.
# --------------------------------------------------------------------------
def _fused_sparsenet_kernel(x_ref, w_ref, b_ref, o_ref, *, num_layers,
                            apply_relu):
    h = x_ref[...]                                    # (Bp, Dmax) f32
    for l in range(num_layers):                       # unrolled: L is small
        acc = jnp.dot(h, w_ref[l],                    # (Dmax, Dmax) weight slab
                      preferred_element_type=jnp.float32)
        acc = acc + b_ref[l]                          # (1, Dmax) broadcast
        if apply_relu and l < num_layers - 1:         # no activation on outLayer
            acc = jnp.maximum(acc, 0.0)
        h = acc
    o_ref[...] = h.astype(o_ref.dtype)


def sparsenet_forward(x, w_stack, b_stack, *, num_out, make_linear):
    """x: (B, Din) f32; w_stack: (L, Dmax, Dmax) pre-transposed & zero-padded;
    b_stack: (L, 1, Dmax). Returns (B, num_out)."""
    L, Dmax, _ = w_stack.shape
    B, Din = x.shape
    Bp = _round_up(max(B, 8), 8)

    # Zero-pad input to a dense (Bp, Dmax) tile; padded rows/cols are inert
    # (padded weight rows/cols and biases are zero, ReLU(0)=0).
    x_pad = jnp.zeros((Bp, Dmax), jnp.float32).at[:B, :Din].set(x)

    kernel = functools.partial(_fused_sparsenet_kernel, num_layers=L,
                               apply_relu=not make_linear)
    out_pad = pl.pallas_call(
        kernel,
        out_shape=jax.ShapeDtypeStruct((Bp, Dmax), jnp.float32),
        grid=(1,),
        in_specs=[
            pl.BlockSpec((Bp, Dmax), lambda i: (0, 0)),
            pl.BlockSpec((L, Dmax, Dmax), lambda i: (0, 0, 0)),
            pl.BlockSpec((L, 1, Dmax), lambda i: (0, 0, 0)),
        ],
        out_specs=pl.BlockSpec((Bp, Dmax), lambda i: (0, 0)),
        compiler_params=pltpu.CompilerParams(
            dimension_semantics=("arbitrary",)),
    )(x_pad, w_stack, b_stack)
    return out_pad[:B, :num_out]


# --------------------------------------------------------------------------
# Parameter construction (mirrors SparseNet.__init__, deterministic)
# --------------------------------------------------------------------------
def _init_linear(key, in_f, out_f, stddev, add_bias):
    kw, kb = jax.random.split(key)
    w = stddev * jax.random.normal(kw, (out_f, in_f), jnp.float32)  # torch layout
    b = (stddev * jax.random.normal(kb, (out_f,), jnp.float32)
         if add_bias else jnp.zeros((out_f,), jnp.float32))
    return w, b


def make_smask(key, dims, fan_in):
    """Boolean mask (True => zero this weight); each output row keeps exactly
    `fan_in` random input connections.
    # TODO(synk): the original make_smask (sparsity_type / connect_type /
    # fan_out_const variants) is not provided; this is the constant-fan-in
    # random mask, applied deterministically.
    """
    out_f, in_f = dims
    scores = jax.random.uniform(key, (out_f, in_f))
    keep_idx = jnp.argsort(scores, axis=1)[:, :fan_in]
    keep = jnp.zeros((out_f, in_f), bool)
    keep = keep.at[jnp.arange(out_f)[:, None], keep_idx].set(True)
    return ~keep


def build_sparsenet_layers(key, num_layers, num_in, num_out, num_mid,
                           add_bias, fan_in):
    """Returns the list of (weight(out,in), bias(out,)) in forward order."""
    num_mid_layers = num_layers - 2
    keys = jax.random.split(key, 2 + 2 * num_mid_layers)

    in_w, in_b = _init_linear(keys[0], num_in, num_mid,
                              1.0 / math.sqrt(num_in), add_bias)
    out_w, out_b = _init_linear(keys[1], num_mid, num_out,
                                1.0 / math.sqrt(num_mid), add_bias)
    layers = [(in_w, in_b)]
    for i in range(num_mid_layers):
        w, b = _init_linear(keys[2 + 2 * i], num_mid, num_mid,
                            1.0 / math.sqrt(fan_in), add_bias)
        m = make_smask(keys[3 + 2 * i], (num_mid, num_mid), fan_in)
        w = jnp.where(m, 0.0, w)                    # layer.weight[M] = 0
        layers.append((w, b))
    layers.append((out_w, out_b))
    return layers


def pack_layers(layer_list):
    """Pre-transpose to (in, out), zero-pad each to (Dmax, Dmax), stack.
    Done once at build time — no per-forward transpose/pad of weights."""
    L = len(layer_list)
    dmax = max(max(w.shape) for (w, _) in layer_list)
    Dmax = _round_up(max(dmax, 128), 128)           # lane-dense
    w_stack = jnp.zeros((L, Dmax, Dmax), jnp.float32)
    b_stack = jnp.zeros((L, 1, Dmax), jnp.float32)
    for l, (w, b) in enumerate(layer_list):
        out_f, in_f = w.shape
        w_stack = w_stack.at[l, :in_f, :out_f].set(w.T)   # pre-transposed
        b_stack = b_stack.at[l, 0, :out_f].set(b)
    return w_stack, b_stack


# --------------------------------------------------------------------------
if __name__ == "__main__":
    # Small, forward-consistent shapes.
    num_layers = 4                    # -> 2 mid layers
    num_in, num_mid, num_out = 32, 128, 16
    fan_in = 4
    add_bias = True
    make_linear = False
    batch = 8

    key = jax.random.PRNGKey(0)
    kx, kp = jax.random.split(key)

    layers = build_sparsenet_layers(kp, num_layers, num_in, num_out, num_mid,
                                    add_bias, fan_in)
    w_stack, b_stack = pack_layers(layers)
    x = jax.random.normal(kx, (batch, num_in), jnp.float32)

    fwd = jax.jit(functools.partial(sparsenet_forward, num_out=num_out,
                                    make_linear=make_linear))
    y = fwd(x, w_stack, b_stack)
    jax.block_until_ready(y)

    # Pure-JAX reference of the same math (torch layout weights).
    ref = x
    last = len(layers) - 1
    for i, (w, b) in enumerate(layers):
        ref = ref @ w.T + b
        if (not make_linear) and i < last:
            ref = jnp.maximum(ref, 0.0)

    assert y.shape == (batch, num_out)
    assert jnp.allclose(y, ref, atol=1e-4, rtol=1e-4)

    print("KERNEL_OK")
</pallas_src>

<mosaic_0001>
module attributes {stable_mosaic.version = 11 : i64} {
  func.func @_fused_sparsenet_kernel(%arg0: i32, %arg1: memref<8x128xf32, #tpu.memory_space<vmem>>, %arg2: memref<4x128x128xf32, #tpu.memory_space<vmem>>, %arg3: memref<4x1x128xf32, #tpu.memory_space<vmem>>, %arg4: memref<8x128xf32, #tpu.memory_space<vmem>>) attributes {dimension_semantics = [#tpu.dimension_semantics<arbitrary>], iteration_bounds = array<i64: 1>, scalar_prefetch = 0 : i64, scratch_operands = 0 : i64, tpu.core_type = #tpu.core_type<tc>, window_params = [{pipeline_mode = #tpu.pipeline_mode<synchronous>, transform_indices = @transform_0, window_bounds = array<i64: 8, 128>}, {pipeline_mode = #tpu.pipeline_mode<synchronous>, transform_indices = @transform_1, window_bounds = array<i64: 4, 128, 128>}, {pipeline_mode = #tpu.pipeline_mode<synchronous>, transform_indices = @transform_2, window_bounds = array<i64: 4, 1, 128>}, {pipeline_mode = #tpu.pipeline_mode<synchronous>, transform_indices = @transform_3, window_bounds = array<i64: 8, 128>}]} {
    %c0 = arith.constant 0 : index
    %c0_0 = arith.constant 0 : index
    %0 = vector.load %arg1[%c0, %c0_0] : memref<8x128xf32, #tpu.memory_space<vmem>>, vector<8x128xf32>
    %c0_1 = arith.constant 0 : index
    %c0_2 = arith.constant 0 : index
    %c0_3 = arith.constant 0 : index
    %1 = vector.load %arg2[%c0_1, %c0_2, %c0_3] : memref<4x128x128xf32, #tpu.memory_space<vmem>>, vector<1x128x128xf32>
    %2 = vector.shape_cast %1 : vector<1x128x128xf32> to vector<128x128xf32>
    %cst = arith.constant dense<0.000000e+00> : vector<8x128xf32>
    %3 = tpu.matmul %0, %2, %cst {dimension_numbers = #tpu.dot_dimension_numbers<[1], [0], [0], [1], [0, 0, 1, 1], [], []>} : vector<8x128xf32>, vector<128x128xf32>, vector<8x128xf32> -> vector<8x128xf32>
    %c0_4 = arith.constant 0 : index
    %c0_5 = arith.constant 0 : index
    %c0_6 = arith.constant 0 : index
    %4 = vector.load %arg3[%c0_4, %c0_5, %c0_6] : memref<4x1x128xf32, #tpu.memory_space<vmem>>, vector<1x1x128xf32>
    %5 = vector.shape_cast %4 : vector<1x1x128xf32> to vector<1x128xf32>
    %6 = vector.broadcast %5 : vector<1x128xf32> to vector<8x128xf32>
    %7 = arith.addf %3, %6 : vector<8x128xf32>
    %cst_7 = arith.constant 0.000000e+00 : f32
    %8 = vector.broadcast %cst_7 : f32 to vector<8x128xf32>
    %9 = arith.maximumf %7, %8 : vector<8x128xf32>
    %c1 = arith.constant 1 : index
    %c0_8 = arith.constant 0 : index
    %c0_9 = arith.constant 0 : index
    %10 = vector.load %arg2[%c1, %c0_8, %c0_9] : memref<4x128x128xf32, #tpu.memory_space<vmem>>, vector<1x128x128xf32>
    %11 = vector.shape_cast %10 : vector<1x128x128xf32> to vector<128x128xf32>
    %cst_10 = arith.constant dense<0.000000e+00> : vector<8x128xf32>
    %12 = tpu.matmul %9, %11, %cst_10 {dimension_numbers = #tpu.dot_dimension_numbers<[1], [0], [0], [1], [0, 0, 1, 1], [], []>} : vector<8x128xf32>, vector<128x128xf32>, vector<8x128xf32> -> vector<8x128xf32>
    %c1_11 = arith.constant 1 : index
    %c0_12 = arith.constant 0 : index
    %c0_13 = arith.constant 0 : index
    %13 = vector.load %arg3[%c1_11, %c0_12, %c0_13] : memref<4x1x128xf32, #tpu.memory_space<vmem>>, vector<1x1x128xf32>
    %14 = vector.shape_cast %13 : vector<1x1x128xf32> to vector<1x128xf32>
    %15 = vector.broadcast %14 : vector<1x128xf32> to vector<8x128xf32>
    %16 = arith.addf %12, %15 : vector<8x128xf32>
    %cst_14 = arith.constant 0.000000e+00 : f32
    %17 = vector.broadcast %cst_14 : f32 to vector<8x128xf32>
    %18 = arith.maximumf %16, %17 : vector<8x128xf32>
    %c2 = arith.constant 2 : index
    %c0_15 = arith.constant 0 : index
    %c0_16 = arith.constant 0 : index
    %19 = vector.load %arg2[%c2, %c0_15, %c0_16] : memref<4x128x128xf32, #tpu.memory_space<vmem>>, vector<1x128x128xf32>
    %20 = vector.shape_cast %19 : vector<1x128x128xf32> to vector<128x128xf32>
    %cst_17 = arith.constant dense<0.000000e+00> : vector<8x128xf32>
    %21 = tpu.matmul %18, %20, %cst_17 {dimension_numbers = #tpu.dot_dimension_numbers<[1], [0], [0], [1], [0, 0, 1, 1], [], []>} : vector<8x128xf32>, vector<128x128xf32>, vector<8x128xf32> -> vector<8x128xf32>
    %c2_18 = arith.constant 2 : index
    %c0_19 = arith.constant 0 : index
    %c0_20 = arith.constant 0 : index
    %22 = vector.load %arg3[%c2_18, %c0_19, %c0_20] : memref<4x1x128xf32, #tpu.memory_space<vmem>>, vector<1x1x128xf32>
    %23 = vector.shape_cast %22 : vector<1x1x128xf32> to vector<1x128xf32>
    %24 = vector.broadcast %23 : vector<1x128xf32> to vector<8x128xf32>
    %25 = arith.addf %21, %24 : vector<8x128xf32>
    %cst_21 = arith.constant 0.000000e+00 : f32
    %26 = vector.broadcast %cst_21 : f32 to vector<8x128xf32>
    %27 = arith.maximumf %25, %26 : vector<8x128xf32>
    %c3 = arith.constant 3 : index
    %c0_22 = arith.constant 0 : index
    %c0_23 = arith.constant 0 : index
    %28 = vector.load %arg2[%c3, %c0_22, %c0_23] : memref<4x128x128xf32, #tpu.memory_space<vmem>>, vector<1x128x128xf32>
    %29 = vector.shape_cast %28 : vector<1x128x128xf32> to vector<128x128xf32>
    %cst_24 = arith.constant dense<0.000000e+00> : vector<8x128xf32>
    %30 = tpu.matmul %27, %29, %cst_24 {dimension_numbers = #tpu.dot_dimension_numbers<[1], [0], [0], [1], [0, 0, 1, 1], [], []>} : vector<8x128xf32>, vector<128x128xf32>, vector<8x128xf32> -> vector<8x128xf32>
    %c3_25 = arith.constant 3 : index
    %c0_26 = arith.constant 0 : index
    %c0_27 = arith.constant 0 : index
    %31 = vector.load %arg3[%c3_25, %c0_26, %c0_27] : memref<4x1x128xf32, #tpu.memory_space<vmem>>, vector<1x1x128xf32>
    %32 = vector.shape_cast %31 : vector<1x1x128xf32> to vector<1x128xf32>
    %33 = vector.broadcast %32 : vector<1x128xf32> to vector<8x128xf32>
    %34 = arith.addf %30, %33 : vector<8x128xf32>
    %c0_28 = arith.constant 0 : index
    %c0_29 = arith.constant 0 : index
    %35 = vector.load %arg4[%c0_28, %c0_29] : memref<8x128xf32, #tpu.memory_space<vmem>>, vector<8x128xf32>
    tpu.vector_store %arg4[%c0_28, %c0_29], %34 {strides = array<i32>} : memref<8x128xf32, #tpu.memory_space<vmem>>, vector<8x128xf32>,
    return
  }
  func.func @transform_0(%arg0: i32) -> (i32, i32) {
    %c0_i32 = arith.constant 0 : i32
    %c0_i32_0 = arith.constant 0 : i32
    %c0_i32_1 = arith.constant 0 : i32
    return %c0_i32, %c0_i32_0 : i32, i32
  }
  func.func @transform_1(%arg0: i32) -> (i32, i32, i32) {
    %c0_i32 = arith.constant 0 : i32
    %c0_i32_0 = arith.constant 0 : i32
    %c0_i32_1 = arith.constant 0 : i32
    %c0_i32_2 = arith.constant 0 : i32
    return %c0_i32, %c0_i32_0, %c0_i32_1 : i32, i32, i32
  }
  func.func @transform_2(%arg0: i32) -> (i32, i32, i32) {
    %c0_i32 = arith.constant 0 : i32
    %c0_i32_0 = arith.constant 0 : i32
    %c0_i32_1 = arith.constant 0 : i32
    %c0_i32_2 = arith.constant 0 : i32
    return %c0_i32, %c0_i32_0, %c0_i32_1 : i32, i32, i32
  }
  func.func @transform_3(%arg0: i32) -> (i32, i32) {
    %c0_i32 = arith.constant 0 : i32
    %c0_i32_0 = arith.constant 0 : i32
    %c0_i32_1 = arith.constant 0 : i32
    return %c0_i32, %c0_i32_0 : i32, i32
  }
}

</mosaic_0001>

<bundles_post_ra>
// kernel: sparsenet_forward.1
= control target key start
LH: loop header
LB: loop body
LE: loop exit
PB: predicated region body
PF: predicated region fallthrough
CT: control target
= control target key end

     0   :  { %8 = vsyncpa [#allocation3], 0  ;;  %s899_s0 = inlined_call_operand.vmem [shape: f32[8,128], index: 0, kind: input, shape index: {}]   ;;  %s900_s1 = inlined_call_operand.hbm [shape: f32[4,128,128], index: 1, kind: input, shape index: {}]   ;;  %s901_s2 = inlined_call_operand.vmem [shape: f32[4,1,128], index: 2, kind: input, shape index: {}]   ;;  %s902_s3 = inlined_call_operand.hbm [shape: f32[8,128], index: 3, kind: output, shape index: {}]  }
   0x1   :  { %9 = vsyncpa [#allocation4], 0  ;;  %s793_s12 = smov [#allocation2]   ;;  %s745_s16 = scalar_lea.hbm %s900_s1, 8192 }
   0x2   :  { %s17_s13 = sshll.u32 %s793_s12, 4  ;;  %p746_p0 = scmp.ne.s32.totalorder %s900_s1, %s745_s16  ;;  %s18_s13 = int_to_ptr.vmem [resolvable:$true] %s17_s13 }
   0x3   :  { %p749_p1 = scmp.lt.u32.totalorder %s745_s16, %s900_s1 }
   0x5   :  { %p751_p2 = pnand %p749_p1, %p746_p0 }
   0x7   :  { %754 = shalt.err (!%p751_p2)
}
   0x8   :  { %s755_s21 = scalar_lea.vmem %s18_s13, 8192  ;;  %p760_p4 = scmp.lt.s32.totalorder %s18_s13, %s18_s13 }
   0x9   :  { %p756_p3 = scmp.ne.s32.totalorder %s18_s13, %s755_s21  ;;  %p761_p5 = scmp.lt.s32.totalorder %s755_s21, %s755_s21 }
   0xb   :  { %p762_p6 = por %p761_p5, %p760_p4 }
   0xd   :  { %p763_p7 = pnand %p762_p6, %p756_p3 }
   0xf   :  { %766 = shalt.err (!%p763_p7)
}
  0x10   :  { %s794_s22 = smov 128   ;;  %s795_s23 = smov 8  }
  0x11   :  { %23 = dma.hbm_to_vmem [thread:$0]  %s900_s1, 8192, %s18_s13, [#allocation3], %s794_s22, %s794_s22, %s795_s23  }
  0x12   :  { %789 = dma.done.wait [#allocation3], 8192  }
  0x13   :  { %790 = vsyncadd [#allocation3], 4294959104  ;;  %v796_v0 = vmov 0.0|0.0   ;;  %vm797_vm0 = vmmov 0   ;;  %v798_v1 = vmov 0.0   ;;  %v30_v2 = vld [vmem:[#allocation2] sm:$0xff] }
  0x14   :  { %642 = vmatprep.subr.bf16.mxu0 %v796_v0  ;;  %534 = vmatprep.mubr.msk.f32.mxu0 %vm797_vm0, %v798_v1  ;;  %v31_v3 = vld [vmem:[#allocation2 + $0x8] sm:$0xff]  ;;  %v32_v4 = vld [vmem:[#allocation2 + $0x10] sm:$0xff]  ;;  %v33_v6 = vld [vmem:[#allocation2 + $0x18] sm:$0xff]  ;;  %s799_s7 = smov [#allocation5]  }
  0x15   :  { %666 = vmatprep.subr.bf16.mxu1 %v796_v0  ;;  %569 = vmatprep.mubr.msk.f32.mxu1 %vm797_vm0, %v798_v1  ;;  %v643_v5 = vpack.c.bf16 %v31_v3, %v30_v2  ;;  %v646_v7 = vpack.c.bf16 %v33_v6, %v32_v4  ;;  %v34_v8 = vld [vmem:[#allocation2 + $0x20] sm:$0xff]  ;;  %v35_v9 = vld [vmem:[#allocation2 + $0x28] sm:$0xff]  ;;  %v127_v12 = vld [vmem:[#allocation2 + $0x90] sm:$0xff]  ;;  %s418_s8 = sshll.u32 %s799_s7, 4  ;;  %s419_s8 = int_to_ptr.vmem [resolvable:$true] %s418_s8 }
  0x16   :  { %v125_v10 = vld [vmem:[#allocation2 + $0x80] sm:$0xff]  ;;  %v126_v11 = vld [vmem:[#allocation2 + $0x88] sm:$0xff]  ;;  %v128_v13 = vld [vmem:[#allocation2 + $0x98] sm:$0xff]  ;;  %v649_v14 = vpack.c.bf16 %v35_v9, %v34_v8  ;;  %s767_s9 = scalar_lea.vmem %s419_s8, 128  ;;  %p772_p9 = scmp.lt.s32.totalorder %s419_s8, %s419_s8 }
  0x17   :  { %644 = vmatpush3.bf16.msra.mxu0 %v643_v5  ;;  %v667_v15 = vpack.c.bf16 %v126_v11, %v125_v10  ;;  %v36_v16 = vld [vmem:[#allocation2 + $0x30] sm:$0xff]  ;;  %v37_v17 = vld [vmem:[#allocation2 + $0x38] sm:$0xff]  ;;  %v670_v18 = vpack.c.bf16 %v128_v13, %v127_v12  ;;  %v129_v19 = vld [vmem:[#allocation2 + $0xa0] sm:$0xff]  ;;  %p768_p8 = scmp.ne.s32.totalorder %s419_s8, %s767_s9  ;;  %p773_p10 = scmp.lt.s32.totalorder %s767_s9, %s767_s9 }
  0x18   :  { %645 = vmatprep.subr.bf16.mxu0 %v796_v0  ;;  %v130_v20 = vld [vmem:[#allocation2 + $0xa8] sm:$0xff]  ;;  %v652_v21 = vpack.c.bf16 %v37_v17, %v36_v16  ;;  %v38_v22 = vld [vmem:[#allocation2 + $0x40] sm:$0xff]  ;;  %v131_v25 = vld [vmem:[#allocation2 + $0xb0] sm:$0xff] }
  0x19   :  { %668 = vmatpush3.bf16.msra.mxu1 %v667_v15  ;;  %v39_v23 = vld [vmem:[#allocation2 + $0x48] sm:$0xff]  ;;  %v673_v24 = vpack.c.bf16 %v130_v20, %v129_v19  ;;  %v132_v26 = vld [vmem:[#allocation2 + $0xb8] sm:$0xff]  ;;  %v40_v28 = vld [vmem:[#allocation2 + $0x50] sm:$0xff]  ;;  %p774_p11 = por %p773_p10, %p772_p9 }
  0x1a   :  { %669 = vmatprep.subr.bf16.mxu1 %v796_v0  ;;  %v655_v27 = vpack.c.bf16 %v39_v23, %v38_v22  ;;  %v41_v29 = vld [vmem:[#allocation2 + $0x58] sm:$0xff]  ;;  %v676_v30 = vpack.c.bf16 %v132_v26, %v131_v25  ;;  %v133_v31 = vld [vmem:[#allocation2 + $0xc0] sm:$0xff]  ;;  %v134_v32 = vld [vmem:[#allocation2 + $0xc8] sm:$0xff] }
  0x1b   :  { %647 = vmatpush3.bf16.msra.mxu0 %v646_v7  ;;  %v658_v33 = vpack.c.bf16 %v41_v29, %v40_v28  ;;  %v42_v34 = vld [vmem:[#allocation2 + $0x60] sm:$0xff]  ;;  %v43_v35 = vld [vmem:[#allocation2 + $0x68] sm:$0xff]  ;;  %v679_v36 = vpack.c.bf16 %v134_v32, %v133_v31  ;;  %v135_v37 = vld [vmem:[#allocation2 + $0xd0] sm:$0xff]  ;;  %p775_p12 = pnand %p774_p11, %p768_p8 }
  0x1c   :  { %648 = vmatprep.subr.bf16.mxu0 %v796_v0  ;;  %v136_v38 = vld [vmem:[#allocation2 + $0xd8] sm:$0xff]  ;;  %v661_v39 = vpack.c.bf16 %v43_v35, %v42_v34  ;;  %v44_v40 = vld [vmem:[#allocation2 + $0x70] sm:$0xff]  ;;  %v137_v43 = vld [vmem:[#allocation2 + $0xe0] sm:$0xff] }
  0x1d   :  { %671 = vmatpush3.bf16.msra.mxu1 %v670_v18  ;;  %v45_v41 = vld [vmem:[#allocation2 + $0x78] sm:$0xff]  ;;  %v682_v42 = vpack.c.bf16 %v136_v38, %v135_v37  ;;  %v138_v44 = vld [vmem:[#allocation2 + $0xe8] sm:$0xff]  ;;  %v29_v47 = vld [vmem:[%s899_s0] sm:$0xff] }
  0x1e   :  { %672 = vmatprep.subr.bf16.mxu1 %v796_v0  ;;  %v664_v45 = vpack.c.bf16 %v45_v41, %v44_v40  ;;  %v685_v46 = vpack.c.bf16 %v138_v44, %v137_v43  ;;  %v139_v48 = vld [vmem:[#allocation2 + $0xf0] sm:$0xff]  ;;  %v140_v49 = vld [vmem:[#allocation2 + $0xf8] sm:$0xff]  ;;  %v221_v51 = vld [vmem:[#allocation2 + $0x100] sm:$0xff] }
  0x1f   :  { %650 = vmatpush3.bf16.msra.mxu0 %v649_v14  ;;  %v688_v50 = vpack.c.bf16 %v140_v49, %v139_v48  ;;  %v222_v52 = vld [vmem:[#allocation2 + $0x108] sm:$0xff]  ;;  %v223_v53 = vld [vmem:[#allocation2 + $0x110] sm:$0xff]  ;;  %v224_v55 = vld [vmem:[#allocation2 + $0x118] sm:$0xff] }
  0x20   :  { %651 = vmatprep.subr.bf16.mxu0 %v796_v0  ;;  %v691_v54 = vpack.c.bf16 %v222_v52, %v221_v51  ;;  %v694_v56 = vpack.c.bf16 %v224_v55, %v223_v53  ;;  %v225_v57 = vld [vmem:[#allocation2 + $0x120] sm:$0xff]  ;;  %v226_v58 = vld [vmem:[#allocation2 + $0x128] sm:$0xff]  ;;  %v227_v60 = vld [vmem:[#allocation2 + $0x130] sm:$0xff] }
  0x21   :  { %674 = vmatpush3.bf16.msra.mxu1 %v673_v24  ;;  %v697_v59 = vpack.c.bf16 %v226_v58, %v225_v57  ;;  %v228_v61 = vld [vmem:[#allocation2 + $0x138] sm:$0xff]  ;;  %v229_v63 = vld [vmem:[#allocation2 + $0x140] sm:$0xff]  ;;  %v230_v2 = vld [vmem:[#allocation2 + $0x148] sm:$0xff] }
  0x22   :  { %675 = vmatprep.subr.bf16.mxu1 %v796_v0  ;;  %v700_v62 = vpack.c.bf16 %v228_v61, %v227_v60  ;;  %v703_v3 = vpack.c.bf16 %v230_v2, %v229_v63  ;;  %v231_v4 = vld [vmem:[#allocation2 + $0x150] sm:$0xff]  ;;  %v232_v5 = vld [vmem:[#allocation2 + $0x158] sm:$0xff]  ;;  %v233_v7 = vld [vmem:[#allocation2 + $0x160] sm:$0xff] }
  0x23   :  { %653 = vmatpush3.bf16.msra.mxu0 %v652_v21  ;;  %v706_v6 = vpack.c.bf16 %v232_v5, %v231_v4  ;;  %v234_v8 = vld [vmem:[#allocation2 + $0x168] sm:$0xff]  ;;  %v427_v10 = vld [vmem:[%s901_s2] ss:$0 sm:$0xff]  ;;  %v235_v15 = vld [vmem:[#allocation2 + $0x170] sm:$0xff] }
  0x24   :  { %654 = vmatprep.subr.bf16.mxu0 %v796_v0  ;;  %v709_v9 = vpack.c.bf16 %v234_v8, %v233_v7  ;;  %v236_v16 = vld [vmem:[#allocation2 + $0x178] sm:$0xff]  ;;  %v317_v18 = vld [vmem:[#allocation2 + $0x180] sm:$0xff]  ;;  %v318_v19 = vld [vmem:[#allocation2 + $0x188] sm:$0xff] }
  0x25   :  { %677 = vmatpush3.bf16.msra.mxu1 %v676_v30  ;;  %v712_v17 = vpack.c.bf16 %v236_v16, %v235_v15  ;;  %v319_v20 = vld [vmem:[#allocation2 + $0x190] sm:$0xff]  ;;  %v715_v21 = vpack.c.bf16 %v318_v19, %v317_v18  ;;  %v320_v22 = vld [vmem:[#allocation2 + $0x198] sm:$0xff]  ;;  %v321_v24 = vld [vmem:[#allocation2 + $0x1a0] sm:$0xff] }
  0x26   :  { %678 = vmatprep.subr.bf16.mxu1 %v796_v0  ;;  %v718_v23 = vpack.c.bf16 %v320_v22, %v319_v20  ;;  %v322_v25 = vld [vmem:[#allocation2 + $0x1a8] sm:$0xff]  ;;  %v325_v29 = vld [vmem:[#allocation2 + $0x1c0] sm:$0xff]  ;;  %v327_v32 = vld [vmem:[#allocation2 + $0x1d0] sm:$0xff] }
  0x27   :  { %656 = vmatpush3.bf16.msra.mxu0 %v655_v27  ;;  %v721_v26 = vpack.c.bf16 %v322_v25, %v321_v24  ;;  %v324_v27 = vld [vmem:[#allocation2 + $0x1b8] sm:$0xff]  ;;  %v326_v30 = vld [vmem:[#allocation2 + $0x1c8] sm:$0xff]  ;;  %v329_v35 = vld [vmem:[#allocation2 + $0x1e0] sm:$0xff] }
  0x28   :  { %657 = vmatprep.subr.bf16.mxu0 %v796_v0  ;;  %v727_v31 = vpack.c.bf16 %v326_v30, %v325_v29  ;;  %v429_v38 = vld [vmem:[%s901_s2 + $0x1] ss:$0 sm:$0xff]  ;;  %v331_v43 = vld [vmem:[#allocation2 + $0x1f0] sm:$0xff]  ;;  %v332_v44 = vld [vmem:[#allocation2 + $0x1f8] sm:$0xff] }
  0x29   :  { %680 = vmatpush3.bf16.msra.mxu1 %v679_v36  ;;  %v330_v36 = vld [vmem:[#allocation2 + $0x1e8] sm:$0xff] }
  0x2a   :  { %681 = vmatprep.subr.bf16.mxu1 %v796_v0  ;;  %v733_v37 = vpack.c.bf16 %v330_v36, %v329_v35 }
  0x2b   :  { %659 = vmatpush3.bf16.msra.mxu0 %v658_v33  ;;  %v328_v33 = vld [vmem:[#allocation2 + $0x1d8] sm:$0xff] }
  0x2c   :  { %660 = vmatprep.subr.bf16.mxu0 %v796_v0  ;;  %v730_v34 = vpack.c.bf16 %v328_v33, %v327_v32 }
  0x2d   :  { %683 = vmatpush3.bf16.msra.mxu1 %v682_v42 }
  0x2e   :  { %684 = vmatprep.subr.bf16.mxu1 %v796_v0 }
  0x2f   :  { %662 = vmatpush3.bf16.msra.mxu0 %v661_v39 }
  0x30   :  { %663 = vmatprep.subr.bf16.mxu0 %v796_v0 }
  0x31   :  { %686 = vmatpush3.bf16.msra.mxu1 %v685_v46  ;;  %v431_v46 = vld [vmem:[%s901_s2 + $0x2] ss:$0 sm:$0xff] }
  0x32   :  { %687 = vmatprep.subr.bf16.mxu1 %v796_v0 }
  0x33   :  { %665 = vmatpush3.bf16.msra.mxu0 %v664_v45  ;;  %v736_v45 = vpack.c.bf16 %v332_v44, %v331_v43 }
  0x34   :  { %690 = vmatprep.subr.bf16.mxu0 %v796_v0 }
  0x35   :  { %689 = vmatpush3.bf16.msra.mxu1 %v688_v50  ;;  %v433_v50 = vld [vmem:[%s901_s2 + $0x3] ss:$0 sm:$0xff] }
  0x36   :  { %535 = vmatmul.mubr.f32.vlgmr.msra.gmra.mrb[0].mxu0 %v29_v47  ;;  %714 = vmatprep.subr.bf16.mxu1 %v796_v0 }
  0x37   :  { %604 = vmatprep.mubr.msk.f32.mxu0 %vm797_vm0, %v798_v1  ;;  %692 = vmatpush3.bf16.msra.mxu0 %v691_v54 }
  0x38   :  { %693 = vmatprep.subr.bf16.mxu0 %v796_v0 }
  0x3b   :  { %695 = vmatpush3.bf16.msra.mxu0 %v694_v56 }
  0x3c   :  { %696 = vmatprep.subr.bf16.mxu0 %v796_v0 }
  0x3f   :  { %698 = vmatpush3.bf16.msra.mxu0 %v697_v59 }
  0x40   :  { %699 = vmatprep.subr.bf16.mxu0 %v796_v0 }
  0x43   :  { %701 = vmatpush3.bf16.msra.mxu0 %v700_v62 }
  0x44   :  { %702 = vmatprep.subr.bf16.mxu0 %v796_v0 }
  0x47   :  { %704 = vmatpush3.bf16.msra.mxu0 %v703_v3 }
  0x48   :  { %705 = vmatprep.subr.bf16.mxu0 %v796_v0 }
  0x4b   :  { %707 = vmatpush3.bf16.msra.mxu0 %v706_v6 }
  0x4c   :  { %708 = vmatprep.subr.bf16.mxu0 %v796_v0 }
  0x4f   :  { %710 = vmatpush3.bf16.msra.mxu0 %v709_v9 }
  0x50   :  { %711 = vmatprep.subr.bf16.mxu0 %v796_v0 }
  0x53   :  { %713 = vmatpush3.bf16.msra.mxu0 %v712_v17 }
 0x109   :  { %v119_v11 = vpop.f32.mrb[0].mxu0 }
 0x10a   :  { %v120_v12 = vadd.f32 %v427_v10, %v119_v11  ;;  %v536_v13 = vpop.f32.mrb[1].mxu0 }
 0x10c   :  { %v123_v14 = vmax.f32 %v120_v12, 0.0 }
 0x10e   :  { %570 = vmatmul.mubr.f32.vlgmr.msra.gmra.mrb[0].mxu1 %v123_v14 }
 0x10f   :  { %639 = vmatprep.mubr.msk.f32.mxu1 %vm797_vm0, %v798_v1  ;;  %716 = vmatpush3.bf16.msra.mxu1 %v715_v21  ;;  %v323_v1 = vld [vmem:[#allocation2 + $0x1b0] sm:$0xff] }
 0x110   :  { %717 = vmatprep.subr.bf16.mxu1 %v796_v0  ;;  %v724_v28 = vpack.c.bf16 %v324_v27, %v323_v1 }
 0x113   :  { %719 = vmatpush3.bf16.msra.mxu1 %v718_v23 }
 0x114   :  { %720 = vmatprep.subr.bf16.mxu1 %v796_v0 }
 0x117   :  { %722 = vmatpush3.bf16.msra.mxu1 %v721_v26 }
 0x118   :  { %723 = vmatprep.subr.bf16.mxu1 %v796_v0 }
 0x11b   :  { %725 = vmatpush3.bf16.msra.mxu1 %v724_v28 }
 0x11c   :  { %726 = vmatprep.subr.bf16.mxu1 %v796_v0 }
 0x11f   :  { %728 = vmatpush3.bf16.msra.mxu1 %v727_v31 }
 0x120   :  { %729 = vmatprep.subr.bf16.mxu1 %v796_v0 }
 0x123   :  { %731 = vmatpush3.bf16.msra.mxu1 %v730_v34 }
 0x124   :  { %732 = vmatprep.subr.bf16.mxu1 %v796_v0 }
 0x127   :  { %734 = vmatpush3.bf16.msra.mxu1 %v733_v37 }
 0x128   :  { %735 = vmatprep.subr.bf16.mxu1 %v796_v0 }
 0x12b   :  { %737 = vmatpush3.bf16.msra.mxu1 %v736_v45 }
 0x1e1   :  { %v215_v39 = vpop.f32.mrb[0].mxu1 }
 0x1e2   :  { %v216_v40 = vadd.f32 %v429_v38, %v215_v39  ;;  %v571_v41 = vpop.f32.mrb[1].mxu1 }
 0x1e4   :  { %v219_v42 = vmax.f32 %v216_v40, 0.0 }
 0x1e6   :  { %605 = vmatmul.mubr.f32.vlgmr.msra.gmra.mrb[2].mxu0 %v219_v42 }
 0x2b9   :  { %v311_v47 = vpop.f32.mrb[2].mxu0 }
 0x2ba   :  { %v312_v48 = vadd.f32 %v431_v46, %v311_v47  ;;  %v606_v0 = vpop.f32.mrb[3].mxu0 }
 0x2bc   :  { %v315_v49 = vmax.f32 %v312_v48, 0.0 }
 0x2be   :  { %640 = vmatmul.mubr.f32.vlgmr.msra.gmra.mrb[2].mxu1 %v315_v49 }
 0x391   :  { %v407_v51 = vpop.f32.mrb[2].mxu1 }
 0x392   :  { %v408_v52 = vadd.f32 %v433_v50, %v407_v51  ;;  %v641_v53 = vpop.f32.mrb[3].mxu1 }
 0x394   :  { %411 = vst [vmem:[#allocation5] sm:$0xff] %v408_v52 }
 0x395   :  { %778 = shalt.err (!%p775_p12)
}
 0x396   :  { %s779_s12 = scalar_lea.hbm %s902_s3, 128 }
 0x397   :  { %p780_p13 = scmp.ne.s32.totalorder %s902_s3, %s779_s12  ;;  %p783_p0 = scmp.lt.u32.totalorder %s779_s12, %s902_s3 }
 0x399   :  { %p785_p1 = pnand %p783_p0, %p780_p13 }
 0x39b   :  { %788 = shalt.err (!%p785_p1)
}
 0x39c   :  { %421 = dma.vmem_to_hbm [thread:$0]  %s419_s8, 128, %s902_s3, [#allocation4]  }
 0x39d   :  { %791 = dma.done.wait [#allocation4], 128  }
 0x39e   :  { %792 = vsyncadd [#allocation4], 4294967168 }
 0x39f   :  { %425 = vsyncpa [#allocation3], 1 }
 0x3a0   :  { %426 = vsyncpa [#allocation4], 1 }

</bundles_post_ra>
